<compile_context>
chip_gen: v7x
topology: tpu7x:2x2x1
jax: 0.10.0
libtpu: 0.0.40
codegen_flags: <defaults>
</compile_context>

<pallas_src>
import functools

import jax
import jax.numpy as jnp
from jax.experimental import pallas as pl
from jax.experimental.pallas import tpu as pltpu


def _round_up(x: int, m: int) -> int:
    return ((x + m - 1) // m) * m


def _pick_tile(dim: int, max_tile: int, align: int):
    """Pick a tile (multiple of `align`, <= max_tile) minimizing padded size,
    preferring the largest tile among minimal-padding choices."""
    dim_al = _round_up(dim, align)
    if dim_al <= max_tile:
        return dim_al, dim_al                      # one tile covers the axis
    best = None
    for t in range(max_tile, align - 1, -align):
        padded = _round_up(dim, t)
        key = (padded, -t)
        if best is None or key < best[0]:
            best = (key, t, padded)
    return best[1], best[2]


def _linear_relu_kernel(x_ref, w_ref, b_ref, o_ref, acc_ref):
    # x_ref: (tm, tk)   w_ref: (tk, tn)  (pre-transposed [K, N] weight)
    # b_ref: (1, tn) f32   o_ref: (tm, tn)   acc_ref: (tm, tn) f32 scratch
    k = pl.program_id(2)

    @pl.when(k == 0)
    def _():
        acc_ref[...] = jnp.zeros_like(acc_ref)

    # MXU matmul, f32 accumulation; no transposes anywhere in the kernel.
    acc_ref[...] += jnp.dot(x_ref[...], w_ref[...],
                            preferred_element_type=jnp.float32)

    @pl.when(k == pl.num_programs(2) - 1)
    def _():
        out = acc_ref[...] + b_ref[...]            # bias + ReLU epilogue in f32
        o_ref[...] = jnp.maximum(out, 0.0).astype(o_ref.dtype)


def prepare_linear_cell(weight, bias, *, compute_dtype=jnp.bfloat16,
                        max_tn=512, max_tk=2048):
    """One-time weight preparation (hoisted out of the per-call hot path).

    weight: [out_elements, in_elements]  (PyTorch nn.Linear layout)
    bias:   [out_elements]
    Returns a params dict for `linear_cell_apply`.
    """
    n_out, k_in = weight.shape
    assert bias.shape == (n_out,)
    cdt = jnp.dtype(compute_dtype)
    tn, n_pad = _pick_tile(n_out, max_tn, 128)
    tk, k_pad = _pick_tile(k_in, max_tk, 128)
    # Pad + transpose to [K_pad, N_pad] and cast once (done here, not per call).
    w_t = jnp.pad(weight, ((0, n_pad - n_out), (0, k_pad - k_in))).T.astype(cdt)
    b_row = jnp.pad(bias, (0, n_pad - n_out)).reshape(1, n_pad).astype(jnp.float32)
    return dict(w_t=w_t, b_row=b_row, n_out=n_out, tn=tn, tk=tk,
                compute_dtype=cdt)


@functools.partial(jax.jit,
                   static_argnames=("n_out", "tn", "tk", "compute_dtype"))
def _linear_relu_forward(x, w_t, b_row, *, n_out, tn, tk, compute_dtype):
    """relu(x @ W^T + b) given a pre-padded / pre-transposed weight."""
    B, K = x.shape
    K_pad, N_pad = w_t.shape
    assert K <= K_pad and n_out <= N_pad and N_pad % tn == 0 and K_pad % tk == 0
    out_dtype = x.dtype
    cdt = jnp.dtype(compute_dtype)

    # Batch tile: single i-tile (weight read from HBM exactly once) when it
    # fits; round to the packed sublane multiple of the compute dtype.
    sub = {4: 8, 2: 16, 1: 32}.get(cdt.itemsize, 8)
    if _round_up(B, sub) <= 512:
        tm = B_pad = _round_up(B, sub)
    else:
        tm, B_pad = _pick_tile(B, 512, 128)

    # Megacore: if the problem is a single (i, j) tile, split N across j so
    # both TensorCores (v7x) get work. Keep the lane tile 128-aligned.
    if B_pad // tm == 1 and N_pad // tn == 1 and tn % 256 == 0:
        tn //= 2

    grid = (B_pad // tm, N_pad // tn, K_pad // tk)

    # Honest VMEM budget: double-buffered x/w/bias/out tiles + f32 accumulator.
    vmem_bytes = (
        2 * (tm * tk + tk * tn) * cdt.itemsize
        + 2 * tn * 4
        + 2 * tm * tn * jnp.dtype(out_dtype).itemsize
        + tm * tn * 4
    )
    assert vmem_bytes < 40 * 1024 * 1024, "tile choice exceeds VMEM budget"
    vmem_limit = min(max(2 * vmem_bytes, 32 * 1024 * 1024), 48 * 1024 * 1024)

    # Hot path only pads/casts the activations and slices the result.
    x_p = jnp.pad(x, ((0, B_pad - B), (0, K_pad - K))).astype(cdt)

    flops = 2 * B_pad * K_pad * N_pad
    bytes_accessed = (
        B_pad * K_pad * cdt.itemsize
        + K_pad * N_pad * cdt.itemsize * (B_pad // tm)   # weight re-read per i-tile
        + N_pad * 4
        + B_pad * N_pad * jnp.dtype(out_dtype).itemsize
    )

    out_padded = pl.pallas_call(
        _linear_relu_kernel,
        out_shape=jax.ShapeDtypeStruct((B_pad, N_pad), out_dtype),
        grid_spec=pltpu.PrefetchScalarGridSpec(
            num_scalar_prefetch=0,
            grid=grid,
            in_specs=[
                pl.BlockSpec((tm, tk), lambda i, j, k: (i, k)),  # x tile
                pl.BlockSpec((tk, tn), lambda i, j, k: (k, j)),  # weight [K, N] tile
                pl.BlockSpec((1, tn), lambda i, j, k: (0, j)),   # bias tile
            ],
            out_specs=pl.BlockSpec((tm, tn), lambda i, j, k: (i, j)),
            scratch_shapes=[pltpu.VMEM((tm, tn), jnp.float32)],
        ),
        compiler_params=pltpu.CompilerParams(
            dimension_semantics=("parallel", "parallel", "arbitrary"),
            vmem_limit_bytes=vmem_limit,
        ),
        cost_estimate=pl.CostEstimate(
            flops=flops, transcendentals=0, bytes_accessed=bytes_accessed),
    )(x_p, w_t, b_row)

    return out_padded[:B, :n_out]


def linear_cell_apply(x, params):
    """Hot-path forward with pre-prepared weights (preferred entry point)."""
    return _linear_relu_forward(
        x, params["w_t"], params["b_row"],
        n_out=params["n_out"], tn=params["tn"], tk=params["tk"],
        compute_dtype=params["compute_dtype"])


def linear_cell_forward(x, weight, bias, *, compute_dtype=jnp.bfloat16):
    """Convenience one-shot path (weight prep NOT hoisted; prefer
    prepare_linear_cell + linear_cell_apply for repeated calls)."""
    return linear_cell_apply(
        x, prepare_linear_cell(weight, bias, compute_dtype=compute_dtype))


if __name__ == "__main__":
    key = jax.random.PRNGKey(0)
    kx, kw, kb = jax.random.split(key, 3)

    batch, in_elements, out_elements = 16, 32, 64
    x = jax.random.normal(kx, (batch, in_elements), dtype=jnp.float32)
    # Deterministic init mimicking nn.Linear's uniform(-1/sqrt(in), 1/sqrt(in)).
    bound = 1.0 / (in_elements ** 0.5)
    weight = jax.random.uniform(kw, (out_elements, in_elements),
                                minval=-bound, maxval=bound, dtype=jnp.float32)
    bias = jax.random.uniform(kb, (out_elements,),
                              minval=-bound, maxval=bound, dtype=jnp.float32)

    # f32 compute path: tight match against the PyTorch-style reference.
    params_f32 = prepare_linear_cell(weight, bias, compute_dtype=jnp.float32)
    out = linear_cell_apply(x, params_f32)
    jax.block_until_ready(out)
    ref = jnp.maximum(x @ weight.T + bias, 0.0)
    assert out.shape == (batch, out_elements)
    assert jnp.allclose(out, ref, atol=1e-5, rtol=1e-5)

    # Default bf16-compute path (fast MXU dtype); compare vs bf16-cast reference.
    params_bf16 = prepare_linear_cell(weight, bias)   # compute_dtype=bfloat16
    out_bf = linear_cell_apply(x, params_bf16)
    jax.block_until_ready(out_bf)
    ref_bf = jnp.maximum(
        x.astype(jnp.bfloat16).astype(jnp.float32)
        @ weight.astype(jnp.bfloat16).astype(jnp.float32).T + bias, 0.0)
    assert jnp.allclose(out_bf, ref_bf, atol=1e-3, rtol=1e-2)

    # Non-aligned shape to exercise the padding / tiling path.
    B2, K2, N2 = 130, 200, 300
    x2 = jax.random.normal(kx, (B2, K2), dtype=jnp.float32)
    w2 = jax.random.normal(kw, (N2, K2), dtype=jnp.float32) * 0.05
    b2 = jax.random.normal(kb, (N2,), dtype=jnp.float32) * 0.05
    p2 = prepare_linear_cell(w2, b2, compute_dtype=jnp.float32)
    out2 = linear_cell_apply(x2, p2)
    jax.block_until_ready(out2)
    ref2 = jnp.maximum(x2 @ w2.T + b2, 0.0)
    assert out2.shape == (B2, N2)
    assert jnp.allclose(out2, ref2, atol=1e-4, rtol=1e-4)

    print("KERNEL_OK")
</pallas_src>

<mosaic_0001>
module attributes {stable_mosaic.version = 11 : i64} {
  func.func @_linear_relu_kernel(%arg0: i32, %arg1: i32, %arg2: i32, %arg3: memref<16x128xf32, #tpu.memory_space<vmem>>, %arg4: memref<128x128xf32, #tpu.memory_space<vmem>>, %arg5: memref<1x128xf32, #tpu.memory_space<vmem>>, %arg6: memref<16x128xf32, #tpu.memory_space<vmem>>, %arg7: memref<16x128xf32, #tpu.memory_space<vmem>>) attributes {dimension_semantics = [#tpu.dimension_semantics<parallel>, #tpu.dimension_semantics<parallel>, #tpu.dimension_semantics<arbitrary>], iteration_bounds = array<i64: 1, 1, 1>, scalar_prefetch = 0 : i64, scratch_operands = 1 : i64, tpu.core_type = #tpu.core_type<tc>, window_params = [{transform_indices = @transform_0, window_bounds = array<i64: 16, 128>}, {transform_indices = @transform_1, window_bounds = array<i64: 128, 128>}, {transform_indices = @transform_2, window_bounds = array<i64: 1, 128>}, {transform_indices = @transform_3, window_bounds = array<i64: 16, 128>}]} {
    %c0_i32 = arith.constant 0 : i32
    %0 = arith.cmpi eq, %arg2, %c0_i32 : i32
    %1 = arith.extui %0 : i1 to i32
    %c0_i32_0 = arith.constant 0 : i32
    %2 = arith.cmpi ne, %1, %c0_i32_0 : i32
    scf.if %2 {
      %cst_10 = arith.constant 0.000000e+00 : f32
      %12 = vector.broadcast %cst_10 : f32 to vector<16x128xf32>
      %c0_11 = arith.constant 0 : index
      %c0_12 = arith.constant 0 : index
      %13 = vector.load %arg7[%c0_11, %c0_12] : memref<16x128xf32, #tpu.memory_space<vmem>>, vector<16x128xf32>
      tpu.vector_store %arg7[%c0_11, %c0_12], %12 {strides = array<i32>} : memref<16x128xf32, #tpu.memory_space<vmem>>, vector<16x128xf32>,
    } else {
    }
    %c0 = arith.constant 0 : index
    %c0_1 = arith.constant 0 : index
    %3 = vector.load %arg7[%c0, %c0_1] : memref<16x128xf32, #tpu.memory_space<vmem>>, vector<16x128xf32>
    %c0_2 = arith.constant 0 : index
    %c0_3 = arith.constant 0 : index
    %4 = vector.load %arg3[%c0_2, %c0_3] : memref<16x128xf32, #tpu.memory_space<vmem>>, vector<16x128xf32>
    %c0_4 = arith.constant 0 : index
    %c0_5 = arith.constant 0 : index
    %5 = vector.load %arg4[%c0_4, %c0_5] : memref<128x128xf32, #tpu.memory_space<vmem>>, vector<128x128xf32>
    %cst = arith.constant dense<0.000000e+00> : vector<16x128xf32>
    %6 = tpu.matmul %4, %5, %cst {dimension_numbers = #tpu.dot_dimension_numbers<[1], [0], [0], [1], [0, 0, 1, 1], [], []>} : vector<16x128xf32>, vector<128x128xf32>, vector<16x128xf32> -> vector<16x128xf32>
    %7 = arith.addf %3, %6 : vector<16x128xf32>
    %c0_6 = arith.constant 0 : index
    %c0_7 = arith.constant 0 : index
    %8 = vector.load %arg7[%c0_6, %c0_7] : memref<16x128xf32, #tpu.memory_space<vmem>>, vector<16x128xf32>
    tpu.vector_store %arg7[%c0_6, %c0_7], %7 {strides = array<i32>} : memref<16x128xf32, #tpu.memory_space<vmem>>, vector<16x128xf32>,
    %c0_i32_8 = arith.constant 0 : i32
    %9 = arith.cmpi eq, %arg2, %c0_i32_8 : i32
    %10 = arith.extui %9 : i1 to i32
    %c0_i32_9 = arith.constant 0 : i32
    %11 = arith.cmpi ne, %10, %c0_i32_9 : i32
    scf.if %11 {
      %c0_10 = arith.constant 0 : index
      %c0_11 = arith.constant 0 : index
      %12 = vector.load %arg7[%c0_10, %c0_11] : memref<16x128xf32, #tpu.memory_space<vmem>>, vector<16x128xf32>
      %c0_12 = arith.constant 0 : index
      %c0_13 = arith.constant 0 : index
      %13 = vector.load %arg5[%c0_12, %c0_13] : memref<1x128xf32, #tpu.memory_space<vmem>>, vector<1x128xf32>
      %14 = vector.broadcast %13 : vector<1x128xf32> to vector<16x128xf32>
      %15 = arith.addf %12, %14 : vector<16x128xf32>
      %cst_14 = arith.constant 0.000000e+00 : f32
      %16 = vector.broadcast %cst_14 : f32 to vector<16x128xf32>
      %17 = arith.maximumf %15, %16 : vector<16x128xf32>
      %c0_15 = arith.constant 0 : index
      %c0_16 = arith.constant 0 : index
      %18 = vector.load %arg6[%c0_15, %c0_16] : memref<16x128xf32, #tpu.memory_space<vmem>>, vector<16x128xf32>
      tpu.vector_store %arg6[%c0_15, %c0_16], %17 {strides = array<i32>} : memref<16x128xf32, #tpu.memory_space<vmem>>, vector<16x128xf32>,
    } else {
    }
    return
  }
  func.func @transform_0(%arg0: i32, %arg1: i32, %arg2: i32) -> (i32, i32) {
    %c0_i32 = arith.constant 0 : i32
    return %arg0, %arg2 : i32, i32
  }
  func.func @transform_1(%arg0: i32, %arg1: i32, %arg2: i32) -> (i32, i32) {
    %c0_i32 = arith.constant 0 : i32
    return %arg2, %arg1 : i32, i32
  }
  func.func @transform_2(%arg0: i32, %arg1: i32, %arg2: i32) -> (i32, i32) {
    %c0_i32 = arith.constant 0 : i32
    %c0_i32_0 = arith.constant 0 : i32
    return %c0_i32, %arg1 : i32, i32
  }
  func.func @transform_3(%arg0: i32, %arg1: i32, %arg2: i32) -> (i32, i32) {
    %c0_i32 = arith.constant 0 : i32
    return %arg0, %arg1 : i32, i32
  }
}

</mosaic_0001>

<bundles_post_ra>
// kernel: _linear_relu_forward.1
= control target key start
LH: loop header
LB: loop body
LE: loop exit
PB: predicated region body
PF: predicated region fallthrough
CT: control target
= control target key end

     0   :  { %8 = vsyncpa [#allocation4], 0  ;;  %s370_s0 = inlined_call_operand.vmem [shape: f32[16,128], index: 0, kind: input, shape index: {}]   ;;  %s371_s1 = inlined_call_operand.hbm [shape: f32[128,128], index: 1, kind: input, shape index: {}]   ;;  %s372_s2 = inlined_call_operand.vmem [shape: f32[1,128], index: 2, kind: input, shape index: {}]   ;;  %s373_s3 = inlined_call_operand.hbm [shape: f32[16,128], index: 3, kind: output, shape index: {}]  }
   0x1   :  { %9 = vsyncpa [#allocation5], 0  ;;  %s307_s12 = smov [#allocation3]   ;;  %s259_s16 = scalar_lea.hbm %s371_s1, 2048 }
   0x2   :  { %s17_s13 = sshll.u32 %s307_s12, 4  ;;  %p260_p0 = scmp.ne.s32.totalorder %s371_s1, %s259_s16  ;;  %s18_s13 = int_to_ptr.vmem [resolvable:$true] %s17_s13 }
   0x3   :  { %p263_p1 = scmp.lt.u32.totalorder %s259_s16, %s371_s1 }
   0x5   :  { %p265_p2 = pnand %p263_p1, %p260_p0 }
   0x7   :  { %268 = shalt.err (!%p265_p2)
}
   0x8   :  { %s269_s21 = scalar_lea.vmem %s18_s13, 2048  ;;  %p274_p4 = scmp.lt.s32.totalorder %s18_s13, %s18_s13 }
   0x9   :  { %p270_p3 = scmp.ne.s32.totalorder %s18_s13, %s269_s21  ;;  %p275_p5 = scmp.lt.s32.totalorder %s269_s21, %s269_s21 }
   0xb   :  { %p276_p6 = por %p275_p5, %p274_p4 }
   0xd   :  { %p277_p7 = pnand %p276_p6, %p270_p3 }
   0xf   :  { %280 = shalt.err (!%p277_p7)
}
  0x10   :  { %s308_s22 = smov 128   ;;  %s309_s23 = smov 8  }
  0x11   :  { %23 = dma.hbm_to_vmem [thread:$0]  %s371_s1, 2048, %s18_s13, [#allocation4], %s308_s22, %s308_s22, %s309_s23  }
  0x12   :  { %303 = dma.done.wait [#allocation4], 2048  }
  0x13   :  { %304 = vsyncadd [#allocation4], 4294965248  ;;  %v39_v0 = vld [vmem:[#allocation3] sm:$0xff]  ;;  %v40_v1 = vld [vmem:[#allocation3 + $0x8] sm:$0xff]  ;;  %s310_s4 = smov [#allocation6]  }
  0x14   :  { %v41_v2 = vld [vmem:[#allocation3 + $0x10] sm:$0xff]  ;;  %v223_v3 = vpack.c.bf16 %v40_v1, %v39_v0  ;;  %v42_v4 = vld [vmem:[#allocation3 + $0x18] sm:$0xff]  ;;  %v43_v6 = vld [vmem:[#allocation3 + $0x20] sm:$0xff]  ;;  %s157_s5 = sshll.u32 %s310_s4, 4  ;;  %s158_s5 = int_to_ptr.vmem [resolvable:$true] %s157_s5 }
  0x15   :  { %v227_v5 = vpack.c.bf16 %v42_v4, %v41_v2  ;;  %v44_v7 = vld [vmem:[#allocation3 + $0x28] sm:$0xff]  ;;  %v37_v9 = vld [vmem:[%s370_s0] sm:$0xff]  ;;  %v46_v11 = vld [vmem:[#allocation3 + $0x38] sm:$0xff]  ;;  %s281_s6 = scalar_lea.vmem %s158_s5, 256  ;;  %p286_p9 = scmp.lt.s32.totalorder %s158_s5, %s158_s5 }
  0x16   :  { %224 = vmatprep.subr.bf16.mxu0 %v223_v3  ;;  %v231_v8 = vpack.c.bf16 %v44_v7, %v43_v6  ;;  %v45_v10 = vld [vmem:[#allocation3 + $0x30] sm:$0xff]  ;;  %220 = vmatprep.mubr.f32.mxu0 %v37_v9  ;;  %v47_v13 = vld [vmem:[#allocation3 + $0x40] sm:$0xff]  ;;  %v48_v14 = vld [vmem:[#allocation3 + $0x48] sm:$0xff]  ;;  %p282_p8 = scmp.ne.s32.totalorder %s158_s5, %s281_s6  ;;  %p287_p10 = scmp.lt.s32.totalorder %s281_s6, %s281_s6 }
  0x17   :  { %226 = vmatpush3.bf16.msra.mxu0 %v223_v3  ;;  %v235_v12 = vpack.c.bf16 %v46_v11, %v45_v10  ;;  %v239_v15 = vpack.c.bf16 %v48_v14, %v47_v13  ;;  %v49_v16 = vld [vmem:[#allocation3 + $0x50] sm:$0xff]  ;;  %v50_v17 = vld [vmem:[#allocation3 + $0x58] sm:$0xff]  ;;  %v51_v19 = vld [vmem:[#allocation3 + $0x60] sm:$0xff] }
  0x18   :  { %228 = vmatprep.subr.bf16.mxu0 %v227_v5  ;;  %v243_v18 = vpack.c.bf16 %v50_v17, %v49_v16  ;;  %v52_v20 = vld [vmem:[#allocation3 + $0x68] sm:$0xff]  ;;  %v53_v22 = vld [vmem:[#allocation3 + $0x70] sm:$0xff]  ;;  %v54_v23 = vld [vmem:[#allocation3 + $0x78] sm:$0xff]  ;;  %p288_p11 = por %p287_p10, %p286_p9 }
  0x19   :  { %v247_v21 = vpack.c.bf16 %v52_v20, %v51_v19  ;;  %v251_v24 = vpack.c.bf16 %v54_v23, %v53_v22  ;;  %v38_v25 = vld [vmem:[%s370_s0 + $0x8] sm:$0xff]  ;;  %v169_v26 = vld [vmem:[%s372_s2] ss:$0 sm:$0xff] }
  0x1a   :  { %p289_p12 = pnand %p288_p11, %p282_p8 }
  0x1b   :  { %230 = vmatpush3.bf16.msra.mxu0 %v227_v5 }
  0x1c   :  { %232 = vmatprep.subr.bf16.mxu0 %v231_v8 }
  0x1f   :  { %234 = vmatpush3.bf16.msra.mxu0 %v231_v8 }
  0x20   :  { %236 = vmatprep.subr.bf16.mxu0 %v235_v12 }
  0x23   :  { %238 = vmatpush3.bf16.msra.mxu0 %v235_v12 }
  0x24   :  { %240 = vmatprep.subr.bf16.mxu0 %v239_v15 }
  0x27   :  { %242 = vmatpush3.bf16.msra.mxu0 %v239_v15 }
  0x28   :  { %244 = vmatprep.subr.bf16.mxu0 %v243_v18 }
  0x2b   :  { %246 = vmatpush3.bf16.msra.mxu0 %v243_v18 }
  0x2c   :  { %248 = vmatprep.subr.bf16.mxu0 %v247_v21 }
  0x2f   :  { %250 = vmatpush3.bf16.msra.mxu0 %v247_v21 }
  0x30   :  { %252 = vmatprep.subr.bf16.mxu0 %v251_v24 }
  0x33   :  { %254 = vmatpush3.bf16.msra.mxu0 %v251_v24 }
  0x36   :  { %221 = vmatmul.mubr.f32.vlgmr.msra.gmra.mrb[0].mxu0 %v38_v25 }
 0x109   :  { %v222_v27 = vpop.f32.mrb[0].mxu0 }
 0x10a   :  { %v147_v28 = vadd.f32 %v222_v27, %v169_v26  ;;  %v121_v29 = vpop.f32.mrb[1].mxu0 }
 0x10b   :  { %v146_v30 = vadd.f32 %v169_v26, %v121_v29 }
 0x10c   :  { %v149_v31 = vmax.f32 %v147_v28, 0.0 }
 0x10d   :  { %v148_v32 = vmax.f32 %v146_v30, 0.0 }
 0x10e   :  { %151 = vst [vmem:[#allocation6 + $0x8] sm:$0xff] %v149_v31 }
 0x10f   :  { %150 = vst [vmem:[#allocation6] sm:$0xff] %v148_v32 }
 0x110   :  { %292 = shalt.err (!%p289_p12)
}
 0x111   :  { %s293_s7 = scalar_lea.hbm %s373_s3, 256 }
 0x112   :  { %p294_p13 = scmp.ne.s32.totalorder %s373_s3, %s293_s7  ;;  %p297_p0 = scmp.lt.u32.totalorder %s293_s7, %s373_s3 }
 0x114   :  { %p299_p1 = pnand %p297_p0, %p294_p13 }
 0x116   :  { %302 = shalt.err (!%p299_p1)
}
 0x117   :  { %163 = dma.vmem_to_hbm [thread:$0]  %s158_s5, 256, %s373_s3, [#allocation5], %s308_s22, %s308_s22, %s309_s23  }
 0x118   :  { %305 = dma.done.wait [#allocation5], 256  }
 0x119   :  { %306 = vsyncadd [#allocation5], 4294967040 }
 0x11a   :  { %167 = vsyncpa [#allocation4], 1 }
 0x11b   :  { %168 = vsyncpa [#allocation5], 1 }

</bundles_post_ra>
